<compile_context>
chip_gen: v5e
topology: v5e:2x2
jax: 0.10.0
libtpu: 0.0.40
codegen_flags: <defaults>
</compile_context>

<pallas_src>
import math
import functools

import jax
import jax.numpy as jnp
from jax.experimental import pallas as pl
from jax.experimental.pallas import tpu as pltpu


def _round_up(x, m):
    return ((x + m - 1) // m) * m


def _gaussian_1d(size, std):
    """One axis of GaussianSmoothing.create_gaussian_kernel, normalized to
    sum 1.  Keeps the module's (x - mean) / (2 * std) exponent (intentional
    parity with the PyTorch code).  Returns Python floats -> compile-time
    constants baked into the kernel as scalar immediates."""
    mean = (size - 1) / 2.0
    vals = [
        1.0 / (std * math.sqrt(2.0 * math.pi))
        * math.exp(-(((i - mean) / (2.0 * std)) ** 2))
        for i in range(size)
    ]
    s = sum(vals)
    return tuple(v / s for v in vals)


def create_gaussian_kernel(kernel_size, sigma):
    """2-D kernel exactly as the PyTorch module builds it (reference check).
    Equals outer(_gaussian_1d(kh), _gaussian_1d(kw)) after normalization."""
    grids = jnp.meshgrid(
        *[jnp.arange(size, dtype=jnp.float32) for size in kernel_size],
        indexing="ij",
    )
    kernel = jnp.ones((), dtype=jnp.float32)
    for size, std, mgrid in zip(kernel_size, sigma, grids):
        mean = (size - 1) / 2.0
        kernel = kernel * (
            1.0 / (std * math.sqrt(2.0 * math.pi))
            * jnp.exp(-(((mgrid - mean) / (2.0 * std)) ** 2))
        )
    return kernel / jnp.sum(kernel)


def _smoothing_kernel(x_ref, o_ref, tmp_ref, *, gh, gw):
    # x_ref:   (h_in,   lanes_in)   zero-padded, lane-packed input plane
    # o_ref:   (ho_pad, lanes_out)  lane-dense output slab (128-multiple lanes)
    # tmp_ref: (h_in,   lanes_out)  VMEM scratch holding the horizontal pass
    kh, kw = len(gh), len(gw)
    ho_pad, lanes = o_ref.shape

    # Horizontal (lane-axis) pass on the VPU: static lane slices of the loaded
    # value; taps are scalar immediates.
    x = x_ref[...]
    tmp = x[:, 0:lanes] * gw[0]
    for j in range(1, kw):
        tmp = tmp + x[:, j:j + lanes] * gw[j]
    tmp_ref[...] = tmp

    # Vertical (sublane-axis) pass: re-read the shifted taps through ref
    # slices so the sublane offsets come from the vld slots (VMEM) instead of
    # XLU rotates on live vregs.
    acc = tmp_ref[0:ho_pad, :] * gh[0]
    for i in range(1, kh):
        acc = acc + tmp_ref[i:i + ho_pad, :] * gh[i]
    o_ref[...] = acc.astype(o_ref.dtype)


@functools.partial(jax.jit, static_argnames=("kernel_size", "sigma"))
def gaussian_smoothing(x, kernel_size, sigma):
    """Depthwise 'valid' Gaussian blur of x (N, C, H, W) -> (N, C, Ho, Wo),
    matching the PyTorch module's F.conv2d(x, weight, groups=C).

    All packing / padding / unpacking is inside this single jit, so XLA fuses
    the layout plumbing into the copies around the kernel instead of adding
    separate HBM passes.
    """
    n, c, h, w = x.shape
    kh, kw = kernel_size
    ho, wo = h - kh + 1, w - kw + 1

    gh = _gaussian_1d(kh, float(sigma[0]))
    gw = _gaussian_1d(kw, float(sigma[1]))

    # Lane packing: one W-wide segment per (batch, channel) pair; lane axis
    # rounded up to a multiple of 128 so output stores are unmasked.
    lanes_valid = n * c * w                    # 128 for the test config
    lanes_out = _round_up(lanes_valid, 128)    # lane-dense output width
    lanes_in = lanes_out + (kw - 1)            # + trailing pad for lane taps
    ho_pad = _round_up(ho, 8)                  # trimmed, sublane-aligned rows
    h_in = ho_pad + (kh - 1)                   # rows needed by vertical taps

    # (N,C,H,W) -> (H, N*C*W), then zero-pad rows/lanes for the tap windows.
    xp = jnp.transpose(x, (2, 0, 1, 3)).reshape(h, lanes_valid)
    xp = jnp.pad(xp, ((0, h_in - h), (0, lanes_in - lanes_valid)))

    kern = functools.partial(_smoothing_kernel, gh=gh, gw=gw)

    flops = (h_in * lanes_out * (2 * kw - 1)
             + ho_pad * lanes_out * (2 * kh - 1))
    bytes_accessed = (h_in * lanes_in + ho_pad * lanes_out) * x.dtype.itemsize

    out = pl.pallas_call(
        kern,
        out_shape=jax.ShapeDtypeStruct((ho_pad, lanes_out), x.dtype),
        grid=(1,),   # tiny problem: pay the per-step overhead exactly once
        in_specs=[pl.BlockSpec((h_in, lanes_in), lambda i: (0, 0))],
        out_specs=pl.BlockSpec((ho_pad, lanes_out), lambda i: (0, 0)),
        scratch_shapes=[pltpu.VMEM((h_in, lanes_out), jnp.float32)],
        compiler_params=pltpu.CompilerParams(
            dimension_semantics=("arbitrary",),
        ),
        cost_estimate=pl.CostEstimate(
            flops=flops, transcendentals=0, bytes_accessed=bytes_accessed),
    )(xp)

    # Unpack: (ho_pad, lanes) -> valid rows/segments -> (N, C, Ho, Wo).
    out = out[:ho, :lanes_valid].reshape(ho, n, c, w)[:, :, :, :wo]
    return jnp.transpose(out, (1, 2, 0, 3))


if __name__ == "__main__":
    # Module config: channels=4, kernel_size=5, sigma=1.0, dim=2
    channels = 4
    kernel_size = (5, 5)
    sigma = (1.0, 1.0)

    key = jax.random.PRNGKey(0)
    x = jax.random.normal(key, (2, channels, 16, 16), dtype=jnp.float32)

    out = gaussian_smoothing(x, kernel_size=kernel_size, sigma=sigma)
    out = jax.block_until_ready(out)

    # Shape matches F.conv2d(groups=C, no padding) semantics.
    assert out.shape == (2, channels, 12, 12), out.shape

    # Cross-check against a pure-JAX depthwise valid conv using the module's
    # (repeated) 2-D Gaussian weight.
    k2d = create_gaussian_kernel(kernel_size, sigma)                 # (5, 5)
    weight = jnp.broadcast_to(
        k2d[None, None, :, :], (channels, 1, *k2d.shape)).astype(jnp.float32)
    ref = jax.lax.conv_general_dilated(
        x, weight, window_strides=(1, 1), padding="VALID",
        dimension_numbers=("NCHW", "OIHW", "NCHW"),
        feature_group_count=channels,
    )
    assert jnp.allclose(out, ref, atol=1e-5, rtol=1e-5), \
        float(jnp.max(jnp.abs(out - ref)))

    print("KERNEL_OK")
</pallas_src>

<mosaic_0001>
module attributes {stable_mosaic.version = 11 : i64} {
  func.func @_smoothing_kernel(%arg0: i32, %arg1: memref<20x132xf32, #tpu.memory_space<vmem>>, %arg2: memref<16x128xf32, #tpu.memory_space<vmem>>, %arg3: memref<20x128xf32, #tpu.memory_space<vmem>>) attributes {dimension_semantics = [#tpu.dimension_semantics<arbitrary>], iteration_bounds = array<i64: 1>, scalar_prefetch = 0 : i64, scratch_operands = 1 : i64, tpu.core_type = #tpu.core_type<tc>, window_params = [{pipeline_mode = #tpu.pipeline_mode<synchronous>, transform_indices = @transform_0, window_bounds = array<i64: 20, 132>}, {pipeline_mode = #tpu.pipeline_mode<synchronous>, transform_indices = @transform_1, window_bounds = array<i64: 16, 128>}]} {
    %c0 = arith.constant 0 : index
    %c0_0 = arith.constant 0 : index
    %0 = vector.load %arg1[%c0, %c0_0] : memref<20x132xf32, #tpu.memory_space<vmem>>, vector<20x132xf32>
    %1 = vector.extract_strided_slice %0 {offsets = [0, 0], sizes = [20, 128], strides = [1, 1]} : vector<20x132xf32> to vector<20x128xf32>
    %cst = arith.constant 0.111703366 : f32
    %2 = vector.broadcast %cst : f32 to vector<20x128xf32>
    %3 = arith.mulf %1, %2 : vector<20x128xf32>
    %4 = vector.extract_strided_slice %0 {offsets = [0, 1], sizes = [20, 128], strides = [1, 1]} : vector<20x132xf32> to vector<20x128xf32>
    %cst_1 = arith.constant 0.236476019 : f32
    %5 = vector.broadcast %cst_1 : f32 to vector<20x128xf32>
    %6 = arith.mulf %4, %5 : vector<20x128xf32>
    %7 = arith.addf %3, %6 : vector<20x128xf32>
    %8 = vector.extract_strided_slice %0 {offsets = [0, 2], sizes = [20, 128], strides = [1, 1]} : vector<20x132xf32> to vector<20x128xf32>
    %cst_2 = arith.constant 0.30364123 : f32
    %9 = vector.broadcast %cst_2 : f32 to vector<20x128xf32>
    %10 = arith.mulf %8, %9 : vector<20x128xf32>
    %11 = arith.addf %7, %10 : vector<20x128xf32>
    %12 = vector.extract_strided_slice %0 {offsets = [0, 3], sizes = [20, 128], strides = [1, 1]} : vector<20x132xf32> to vector<20x128xf32>
    %cst_3 = arith.constant 0.236476019 : f32
    %13 = vector.broadcast %cst_3 : f32 to vector<20x128xf32>
    %14 = arith.mulf %12, %13 : vector<20x128xf32>
    %15 = arith.addf %11, %14 : vector<20x128xf32>
    %16 = vector.extract_strided_slice %0 {offsets = [0, 4], sizes = [20, 128], strides = [1, 1]} : vector<20x132xf32> to vector<20x128xf32>
    %cst_4 = arith.constant 0.111703366 : f32
    %17 = vector.broadcast %cst_4 : f32 to vector<20x128xf32>
    %18 = arith.mulf %16, %17 : vector<20x128xf32>
    %19 = arith.addf %15, %18 : vector<20x128xf32>
    %c0_5 = arith.constant 0 : index
    %c0_6 = arith.constant 0 : index
    %20 = vector.load %arg3[%c0_5, %c0_6] : memref<20x128xf32, #tpu.memory_space<vmem>>, vector<20x128xf32>
    tpu.vector_store %arg3[%c0_5, %c0_6], %19 {strides = array<i32>} : memref<20x128xf32, #tpu.memory_space<vmem>>, vector<20x128xf32>,
    %c0_7 = arith.constant 0 : index
    %c0_8 = arith.constant 0 : index
    %21 = vector.load %arg3[%c0_7, %c0_8] : memref<20x128xf32, #tpu.memory_space<vmem>>, vector<16x128xf32>
    %cst_9 = arith.constant 0.111703366 : f32
    %22 = vector.broadcast %cst_9 : f32 to vector<16x128xf32>
    %23 = arith.mulf %21, %22 : vector<16x128xf32>
    %c1 = arith.constant 1 : index
    %c0_10 = arith.constant 0 : index
    %24 = vector.load %arg3[%c1, %c0_10] : memref<20x128xf32, #tpu.memory_space<vmem>>, vector<16x128xf32>
    %cst_11 = arith.constant 0.236476019 : f32
    %25 = vector.broadcast %cst_11 : f32 to vector<16x128xf32>
    %26 = arith.mulf %24, %25 : vector<16x128xf32>
    %27 = arith.addf %23, %26 : vector<16x128xf32>
    %c2 = arith.constant 2 : index
    %c0_12 = arith.constant 0 : index
    %28 = vector.load %arg3[%c2, %c0_12] : memref<20x128xf32, #tpu.memory_space<vmem>>, vector<16x128xf32>
    %cst_13 = arith.constant 0.30364123 : f32
    %29 = vector.broadcast %cst_13 : f32 to vector<16x128xf32>
    %30 = arith.mulf %28, %29 : vector<16x128xf32>
    %31 = arith.addf %27, %30 : vector<16x128xf32>
    %c3 = arith.constant 3 : index
    %c0_14 = arith.constant 0 : index
    %32 = vector.load %arg3[%c3, %c0_14] : memref<20x128xf32, #tpu.memory_space<vmem>>, vector<16x128xf32>
    %cst_15 = arith.constant 0.236476019 : f32
    %33 = vector.broadcast %cst_15 : f32 to vector<16x128xf32>
    %34 = arith.mulf %32, %33 : vector<16x128xf32>
    %35 = arith.addf %31, %34 : vector<16x128xf32>
    %c4 = arith.constant 4 : index
    %c0_16 = arith.constant 0 : index
    %36 = vector.load %arg3[%c4, %c0_16] : memref<20x128xf32, #tpu.memory_space<vmem>>, vector<16x128xf32>
    %cst_17 = arith.constant 0.111703366 : f32
    %37 = vector.broadcast %cst_17 : f32 to vector<16x128xf32>
    %38 = arith.mulf %36, %37 : vector<16x128xf32>
    %39 = arith.addf %35, %38 : vector<16x128xf32>
    %c0_18 = arith.constant 0 : index
    %c0_19 = arith.constant 0 : index
    %40 = vector.load %arg2[%c0_18, %c0_19] : memref<16x128xf32, #tpu.memory_space<vmem>>, vector<16x128xf32>
    tpu.vector_store %arg2[%c0_18, %c0_19], %39 {strides = array<i32>} : memref<16x128xf32, #tpu.memory_space<vmem>>, vector<16x128xf32>,
    return
  }
  func.func @transform_0(%arg0: i32) -> (i32, i32) {
    %c0_i32 = arith.constant 0 : i32
    %c0_i32_0 = arith.constant 0 : i32
    %c0_i32_1 = arith.constant 0 : i32
    return %c0_i32, %c0_i32_0 : i32, i32
  }
  func.func @transform_1(%arg0: i32) -> (i32, i32) {
    %c0_i32 = arith.constant 0 : i32
    %c0_i32_0 = arith.constant 0 : i32
    %c0_i32_1 = arith.constant 0 : i32
    return %c0_i32, %c0_i32_0 : i32, i32
  }
}

</mosaic_0001>

<bundles_post_ra>
// kernel: gaussian_smoothing.1
= control target key start
LH: loop header
LB: loop body
LE: loop exit
PB: predicated region body
PF: predicated region fallthrough
CT: control target
= control target key end

     0   :  { %s179_s12 = smov 127   ;;  %s180_s19 = smov 126   ;;  %vm41_vm0 = vcmask 1039360   ;;  %vm75_vm1 = vcmask 1031168   ;;  %vm97_vm2 = vcmask 1022976   ;;  %vm128_vm3 = vcmask 1014784   ;;  %s229_s0 = inlined_call_operand.vmem [shape: f32[20,132], index: 0, kind: input, shape index: {}]   ;;  %s230_s1 = inlined_call_operand.vmem [shape: f32[16,128], index: 1, kind: output, shape index: {}]  }
   0x1   :  { %v10_v0 = vld [vmem:[%s229_s0 + $0x10] sm:$0xff]  ;;  %v8_v1 = vld [vmem:[%s229_s0] sm:$0xff]  ;;  %v11_v6 = vld [vmem:[%s229_s0 + $0x18] sm:$0xff]  ;;  %s182_s20 = smov 124  }
   0x2   :  { %v19_v2 = vmul.f32 0.23647602, %v10_v0  ;;  %v17_v3 = vmul.f32 0.23647602, %v8_v1  ;;  %v12_v4 = vld [vmem:[%s229_s0 + $0x20] sm:$0xf] }
   0x3   :  { %v21_v5 = vmul.f32 0.23647602, %v12_v4  ;;  %v9_v7 = vld [vmem:[%s229_s0 + $0x8] sm:$0xff]  ;;  %v20_v9 = vmul.f32 0.23647602, %v11_v6 }
   0x4   :  { %33 = vrot.lane.b32.xlu1 %v19_v2, %s179_s12  ;;  %29 = vrot.lane.b32.xlu0 %v17_v3, %s179_s12  ;;  %v13_v8 = vld [vmem:[%s229_s0 + $0x28] sm:$0xf]  ;;  %v18_v10 = vmul.f32 0.23647602, %v9_v7  ;;  %v52_v12 = vmul.f32 0.30364123, %v9_v7 }
   0x5   :  { %37 = vrot.lane.b32.xlu2 %v21_v5, %s179_s12  ;;  %v22_v11 = vmul.f32 0.23647602, %v13_v8  ;;  %v51_v13 = vmul.f32 0.30364123, %v8_v1  ;;  %v53_v14 = vmul.f32 0.30364123, %v10_v0 }
   0x6   :  { %v55_v15 = vmul.f32 0.30364123, %v12_v4  ;;  %v54_v16 = vmul.f32 0.30364123, %v11_v6  ;;  %v56_v17 = vmul.f32 0.30364123, %v13_v8 }
   0x7   :  { %s181_s0 = smov 125   ;;  %v107_v18 = vmul.f32 0.111703366, %v9_v7  ;;  %v14_v19 = vmul.f32 0.111703366, %v8_v1 }
   0x8   :  { %v15_v20 = vmul.f32 0.111703366, %v10_v0  ;;  %v16_v21 = vmul.f32 0.111703366, %v12_v4  ;;  %v108_v22 = vmul.f32 0.111703366, %v11_v6 }
   0x9   :  { %v109_v23 = vmul.f32 0.111703366, %v13_v8 }
   0xc   :  { %35 = vrot.lane.b32.xlu1 %v20_v9, %s179_s12  ;;  %31 = vrot.lane.b32.xlu0 %v18_v10, %s179_s12 }
   0xd   :  { %39 = vrot.lane.b32.xlu2 %v22_v11, %s179_s12 }
  0x14   :  { %65 = vrot.lane.b32.xlu1 %v52_v12, %s180_s19  ;;  %63 = vrot.lane.b32.xlu0 %v51_v13, %s180_s19 }
  0x15   :  { %67 = vrot.lane.b32.xlu2 %v53_v14, %s180_s19 }
  0x1c   :  { %71 = vrot.lane.b32.xlu1 %v55_v15, %s180_s19  ;;  %69 = vrot.lane.b32.xlu0 %v54_v16, %s180_s19 }
  0x1d   :  { %73 = vrot.lane.b32.xlu2 %v56_v17, %s180_s19 }
  0x24   :  { %87 = vrot.lane.b32.xlu1 %v18_v10, %s181_s0  ;;  %85 = vrot.lane.b32.xlu0 %v17_v3, %s181_s0 }
  0x25   :  { %89 = vrot.lane.b32.xlu2 %v19_v2, %s181_s0 }
  0x2c   :  { %93 = vrot.lane.b32.xlu1 %v21_v5, %s181_s0  ;;  %91 = vrot.lane.b32.xlu0 %v20_v9, %s181_s0 }
  0x2d   :  { %95 = vrot.lane.b32.xlu2 %v22_v11, %s181_s0 }
  0x34   :  { %118 = vrot.lane.b32.xlu1 %v107_v18, %s182_s20  ;;  %116 = vrot.lane.b32.xlu0 %v14_v19, %s182_s20 }
  0x35   :  { %120 = vrot.lane.b32.xlu2 %v15_v20, %s182_s20 }
  0x3c   :  { %124 = vrot.lane.b32.xlu1 %v16_v21, %s182_s20  ;;  %122 = vrot.lane.b32.xlu0 %v108_v22, %s182_s20 }
  0x3d   :  { %126 = vrot.lane.b32.xlu2 %v109_v23, %s182_s20 }
  0x5f   :  { %v38_v24 = vpop.permute.xlu2 %37 }
  0x67   :  { %v40_v25 = vpop.permute.xlu2 %39 }
  0x68   :  { %v44_v51 = vsel %vm41_vm0, %v38_v24, %v40_v25 }
  0x69   :  { %v50_v57 = vadd.f32 %v44_v51, %v16_v21 }
  0x6f   :  { %v68_v28 = vpop.permute.xlu2 %67 }
  0x76   :  { %v34_v26 = vpop.permute.xlu1 %33  ;;  %v30_v27 = vpop.permute.xlu0 %29 }
  0x77   :  { %v74_v31 = vpop.permute.xlu2 %73 }
  0x7e   :  { %v36_v29 = vpop.permute.xlu1 %35  ;;  %v32_v30 = vpop.permute.xlu0 %31 }
  0x7f   :  { %v90_v34 = vpop.permute.xlu2 %89  ;;  %v42_v42 = vsel %vm41_vm0, %v30_v27, %v32_v30  ;;  %v43_v52 = vsel %vm41_vm0, %v34_v26, %v36_v29 }
  0x80   :  { %v48_v44 = vadd.f32 %v42_v42, %v14_v19  ;;  %v49_v58 = vadd.f32 %v43_v52, %v15_v20 }
  0x86   :  { %v66_v32 = vpop.permute.xlu1 %65  ;;  %v64_v33 = vpop.permute.xlu0 %63 }
  0x87   :  { %v96_v39 = vpop.permute.xlu2 %95  ;;  %v76_v43 = vsel %vm75_vm1, %v64_v33, %v66_v32 }
  0x88   :  { %v82_v47 = vadd.f32 %v76_v43, %v48_v44 }
  0x8e   :  { %v72_v35 = vpop.permute.xlu1 %71  ;;  %v70_v36 = vpop.permute.xlu0 %69 }
  0x8f   :  { %v121_v45 = vpop.permute.xlu2 %120  ;;  %v78_v55 = vsel %vm75_vm1, %v72_v35, %v74_v31  ;;  %v77_v56 = vsel %vm75_vm1, %v68_v28, %v70_v36 }
  0x90   :  { %v84_v61 = vadd.f32 %v78_v55, %v50_v57  ;;  %v83_v62 = vadd.f32 %v77_v56, %v49_v58 }
  0x96   :  { %v88_v37 = vpop.permute.xlu1 %87  ;;  %v86_v38 = vpop.permute.xlu0 %85 }
  0x97   :  { %v98_v46 = vsel %vm97_vm2, %v86_v38, %v88_v37  ;;  %v127_v63 = vpop.permute.xlu2 %126 }
  0x98   :  { %v104_v48 = vadd.f32 %v98_v46, %v82_v47 }
  0x9e   :  { %v94_v40 = vpop.permute.xlu1 %93  ;;  %v92_v41 = vpop.permute.xlu0 %91 }
  0x9f   :  { %v100_v59 = vsel %vm97_vm2, %v94_v40, %v96_v39  ;;  %v99_v60 = vsel %vm97_vm2, %v90_v34, %v92_v41 }
  0xa0   :  { %v106_v0 = vadd.f32 %v100_v59, %v84_v61  ;;  %v105_v1 = vadd.f32 %v99_v60, %v83_v62 }
  0xa6   :  { %v119_v49 = vpop.permute.xlu1 %118  ;;  %v117_v50 = vpop.permute.xlu0 %116 }
  0xa7   :  { %v129_v53 = vsel %vm128_vm3, %v117_v50, %v119_v49 }
  0xa8   :  { %v135_v54 = vadd.f32 %v129_v53, %v104_v48 }
  0xaa   :  { %138 = vst [vmem:[#allocation2] sm:$0xff] %v135_v54  ;;  %v143_v8 = vmul.f32 0.111703366, %v135_v54 }
  0xae   :  { %v125_v2 = vpop.permute.xlu1 %124  ;;  %v123_v3 = vpop.permute.xlu0 %122 }
  0xaf   :  { %v131_v4 = vsel %vm128_vm3, %v125_v2, %v127_v63  ;;  %v130_v5 = vsel %vm128_vm3, %v121_v45, %v123_v3 }
  0xb0   :  { %v137_v6 = vadd.f32 %v131_v4, %v106_v0  ;;  %v136_v7 = vadd.f32 %v130_v5, %v105_v1 }
  0xb2   :  { %140 = vst [vmem:[#allocation2 + $0x10] sm:$0xf] %v137_v6  ;;  %v144_v9 = vmul.f32 0.111703366, %v136_v7 }
  0xb3   :  { %139 = vst [vmem:[#allocation2 + $0x8] sm:$0xff] %v136_v7 }
  0xba   :  { %v145_v10 = vld [vmem:[#allocation2 + $0x1] sm:$0xff]  ;;  %v146_v11 = vld [vmem:[#allocation2 + $0x9] sm:$0xff] }
  0xbb   :  { %v151_v12 = vld [vmem:[#allocation2 + $0x2] sm:$0xff]  ;;  %v147_v13 = vmul.f32 0.23647602, %v145_v10  ;;  %v148_v14 = vmul.f32 0.23647602, %v146_v11  ;;  %v152_v15 = vld [vmem:[#allocation2 + $0xa] sm:$0xff] }
  0xbc   :  { %v157_v16 = vld [vmem:[#allocation2 + $0x3] sm:$0xff]  ;;  %v158_v17 = vld [vmem:[#allocation2 + $0xb] sm:$0xff]  ;;  %v153_v20 = vmul.f32 0.30364123, %v151_v12  ;;  %v154_v21 = vmul.f32 0.30364123, %v152_v15 }
  0xbd   :  { %v149_v18 = vadd.f32 %v147_v13, %v143_v8  ;;  %v150_v19 = vadd.f32 %v148_v14, %v144_v9  ;;  %v163_v22 = vld [vmem:[#allocation2 + $0x4] sm:$0xff]  ;;  %v164_v23 = vld [vmem:[#allocation2 + $0xc] sm:$0xff]  ;;  %v159_v26 = vmul.f32 0.23647602, %v157_v16  ;;  %v160_v27 = vmul.f32 0.23647602, %v158_v17 }
  0xbe   :  { %v165_v30 = vmul.f32 0.111703366, %v163_v22  ;;  %v166_v31 = vmul.f32 0.111703366, %v164_v23 }
  0xbf   :  { %v155_v24 = vadd.f32 %v153_v20, %v149_v18  ;;  %v156_v25 = vadd.f32 %v154_v21, %v150_v19 }
  0xc1   :  { %v161_v28 = vadd.f32 %v159_v26, %v155_v24  ;;  %v162_v29 = vadd.f32 %v160_v27, %v156_v25 }
  0xc3   :  { %v167_v32 = vadd.f32 %v165_v30, %v161_v28  ;;  %v168_v33 = vadd.f32 %v166_v31, %v162_v29 }
  0xc5   :  { %169 = vst [vmem:[%s230_s1] sm:$0xff] %v167_v32 }
  0xc6   :  { %170 = vst [vmem:[%s230_s1 + $0x8] sm:$0xff] %v168_v33 }

</bundles_post_ra>
